<compile_context>
chip_gen: v5e
topology: v5e:2x2
jax: 0.10.0
libtpu: 0.0.40
codegen_flags: <defaults>
</compile_context>

<pallas_src>
import functools

import jax
import jax.numpy as jnp
from jax import lax
from jax.experimental import pallas as pl
from jax.experimental.pallas import tpu as pltpu

NA_FACTOR = 0.006
ACTIVITY_COLUMN = 7

CONV_KERNELS = (3, 5, 7)
CONV_CHANNELS = 8
KMAX = max(CONV_KERNELS)                    # shared window width (7)
PAD = KMAX // 2                             # halo (3)
HEIGHT = 4                                  # one-hot DNA height
P_RAW = KMAX * HEIGHT                       # 28 contraction rows (kw*4 + h)
FEAT = CONV_CHANNELS * len(CONV_KERNELS)    # 24 merged conv channels
ORIGIN_OUT = 3
TAIL = ORIGIN_OUT + 2                       # 5 = [origin(3) | Ne coeff(2)]
PACK_R, PACK_C = 32, 32                     # param slab page shape


# ----------------------------------------------------------------------------
# Fused Pallas kernel: in-VMEM im2col -> merged conv matmul -> ReLU ->
#                      mean pool (reduce) -> fused [head | Ne] matmul ->
#                      activity additives -> (B, 3)
# ----------------------------------------------------------------------------
def _fused_forward_kernel(dna_ref, na_ref, par_ref, o_ref, *, batch, length):
    # dna_ref: (B, L+6, 4) bf16, halo-padded along L, height on lanes
    # na_ref:  (B, 8) f32
    # par_ref: (3, 32, 32) f32 packed parameter slab
    # o_ref:   (B, 3) f32
    par = par_ref[...]
    wc = par[0, :P_RAW, :FEAT].astype(jnp.bfloat16)      # (28, 24) merged conv w
    bc = par[1, 0:1, :FEAT]                              # (1, 24)  merged conv b
    wt = par[2, :, :TAIL]                                # (32, 5)  fused tail w
    bt = par[1, 1:2, :TAIL]                              # (1, 5)   fused tail b

    # --- in-VMEM im2col: 7 shifted windows -> (B*L, 28) patches (kw-major) --
    x = dna_ref[...]                                     # (B, L+6, 4) bf16
    windows = [x[:, kw:kw + length, :] for kw in range(KMAX)]
    patches = jnp.concatenate(windows, axis=2)           # (B, L, 28)
    patches = patches.reshape(batch * length, P_RAW)     # (B*L, 28)

    # --- merged k=3/5/7 conv branches: ONE bf16 MXU matmul + bias + ReLU ----
    acts = jnp.dot(patches, wc, preferred_element_type=jnp.float32)
    acts = jnp.maximum(acts + bc, 0.0)                   # (B*L, 24)

    # --- global mean pool over L: sublane reduce (1/L folded in) ------------
    pooled = acts.reshape(batch, length, FEAT).sum(axis=1) * (1.0 / length)

    # --- fused tail: [pooled | Na] @ block-diag(head_w, ne_w) ---------------
    na = na_ref[...]                                     # (B, 8)
    lhs = jnp.concatenate([pooled, na], axis=1)          # (B, 32)
    tail = jnp.dot(lhs, wt, preferred_element_type=jnp.float32) + bt  # (B, 5)

    origin = tail[:, :ORIGIN_OUT]                        # (B, 3)
    log_act = jnp.log(na[:, ACTIVITY_COLUMN:ACTIVITY_COLUMN + 1])     # (B, 1)
    ds_add = tail[:, ORIGIN_OUT:ORIGIN_OUT + 1] * log_act * NA_FACTOR  # -> col 2
    dg_add = tail[:, ORIGIN_OUT + 1:ORIGIN_OUT + 2] * log_act * NA_FACTOR  # -> col 1
    ocol = lax.broadcasted_iota(jnp.int32, origin.shape, 1)
    o_ref[...] = (origin
                  + jnp.where(ocol == 2, ds_add, 0.0)
                  + jnp.where(ocol == 1, dg_add, 0.0))


def fused_forward(dna_t, na, param_slab, *, batch, length):
    kernel = functools.partial(_fused_forward_kernel, batch=batch, length=length)
    vmem = lambda: pl.BlockSpec(memory_space=pltpu.MemorySpace.VMEM)
    return pl.pallas_call(
        kernel,
        out_shape=jax.ShapeDtypeStruct((batch, ORIGIN_OUT), jnp.float32),
        in_specs=[vmem(), vmem(), vmem()],
        out_specs=vmem(),
    )(dna_t, na, param_slab)


# ----------------------------------------------------------------------------
# Parameters: per-branch tensors kept raw (for the independent reference) and
# packed once into a single (3, 32, 32) slab for the kernel.
# ----------------------------------------------------------------------------
def init_params(key):
    keys = jax.random.split(key, 2 * len(CONV_KERNELS) + 4)
    conv_ws, conv_bs = [], []
    for i, k in enumerate(CONV_KERNELS):
        w = 0.1 * jax.random.normal(keys[2 * i], (HEIGHT, k, CONV_CHANNELS),
                                    jnp.float32)
        # round to bf16-representable values so the in-kernel bf16 cast is lossless
        w = w.astype(jnp.bfloat16).astype(jnp.float32)
        b = 0.05 * jax.random.normal(keys[2 * i + 1], (CONV_CHANNELS,),
                                     jnp.float32)
        conv_ws.append(w)
        conv_bs.append(b)
    ki = 2 * len(CONV_KERNELS)
    return {
        "conv_ws": conv_ws,                                   # list of (4, k, 8)
        "conv_bs": conv_bs,                                   # list of (8,)
        "head_w": 0.1 * jax.random.normal(keys[ki], (FEAT, ORIGIN_OUT),
                                          jnp.float32),
        "head_b": 0.05 * jax.random.normal(keys[ki + 1], (ORIGIN_OUT,),
                                           jnp.float32),
        "ne_w": 0.1 * jax.random.normal(keys[ki + 2], (ACTIVITY_COLUMN, 2),
                                        jnp.float32),
        "ne_b": 0.05 * jax.random.normal(keys[ki + 3], (2,), jnp.float32),
    }


def pack_params(params):
    """Pack all small parameters into one (3, 32, 32) f32 slab (one DMA).

    page 0: merged conv weight, row = kw*4 + h (kw-major), col = branch-major
            channel; rows 28:32 / cols 24:32 zero.
    page 1: row 0 = merged conv bias (24), row 1 = fused tail bias (5).
    page 2: fused tail weight (32, 5): rows 0:24 = head_w in cols 0:3,
            rows 24:31 = ne_w in cols 3:5, row 31 (activity column) = 0.
    """
    slab = jnp.zeros((3, PACK_R, PACK_C), jnp.float32)

    w_cols = []
    for bi, k in enumerate(CONV_KERNELS):
        off = (KMAX - k) // 2
        w_full = jnp.zeros((KMAX, HEIGHT, CONV_CHANNELS), jnp.float32)
        # embed the k-wide kernel centered in the KMAX window (zeros outside
        # == conv2d padding=k//2 semantics, since the padding is zero)
        w_full = w_full.at[off:off + k].set(
            jnp.transpose(params["conv_ws"][bi], (1, 0, 2)))  # (k, 4, 8)
        w_cols.append(w_full.reshape(KMAX * HEIGHT, CONV_CHANNELS))
    w_merged = jnp.concatenate(w_cols, axis=1)                 # (28, 24)
    slab = slab.at[0, :P_RAW, :FEAT].set(w_merged)

    b_merged = jnp.concatenate(params["conv_bs"], axis=0)      # (24,)
    slab = slab.at[1, 0, :FEAT].set(b_merged)
    tail_b = jnp.concatenate([params["head_b"], params["ne_b"]], axis=0)  # (5,)
    slab = slab.at[1, 1, :TAIL].set(tail_b)

    slab = slab.at[2, :FEAT, :ORIGIN_OUT].set(params["head_w"])
    slab = slab.at[2, FEAT:FEAT + ACTIVITY_COLUMN, ORIGIN_OUT:TAIL].set(
        params["ne_w"])
    return slab


# ----------------------------------------------------------------------------
# Wrapper: halo-pad raw DNA along L and put height on lanes (tiny XLA ops);
# everything else runs inside the single Pallas kernel.
# ----------------------------------------------------------------------------
@jax.jit
def forward(param_slab, dna_data, na_data):
    B, H, L = dna_data.shape
    assert H == HEIGHT
    dna_t = jnp.transpose(
        jnp.pad(dna_data, ((0, 0), (0, 0), (PAD, PAD))),
        (0, 2, 1)).astype(jnp.bfloat16)                        # (B, L+6, 4)
    return fused_forward(dna_t, na_data.astype(jnp.float32), param_slab,
                         batch=B, length=L)


# ----------------------------------------------------------------------------
# Pure-JAX reference: three SEPARATE conv branches (unmerged weights), so the
# merging / im2col / pooling / tail fusion are validated independently.
# ----------------------------------------------------------------------------
def reference_forward(params, dna_data, na_data):
    B, H, L = dna_data.shape
    branch_outs = []
    for bi, k in enumerate(CONV_KERNELS):
        pad = k // 2
        xp = jnp.pad(dna_data, ((0, 0), (0, 0), (pad, pad)))
        win = jnp.stack([xp[:, :, j:j + L] for j in range(k)], axis=-1)  # (B,H,L,k)
        out = jnp.einsum("bhlj,hjc->blc", win, params["conv_ws"][bi])
        branch_outs.append(out + params["conv_bs"][bi])
    acts = jnp.maximum(jnp.concatenate(branch_outs, axis=-1), 0.0)   # (B, L, 24)
    pooled = acts.mean(axis=1)                                       # (B, 24)
    origin = pooled @ params["head_w"] + params["head_b"]            # (B, 3)
    coeff = na_data[:, :ACTIVITY_COLUMN] @ params["ne_w"] + params["ne_b"]
    log_act = jnp.log(na_data[:, ACTIVITY_COLUMN])
    origin = origin.at[:, 2].add(coeff[:, 0] * log_act * NA_FACTOR)
    origin = origin.at[:, 1].add(coeff[:, 1] * log_act * NA_FACTOR)
    return origin


if __name__ == "__main__":
    key = jax.random.PRNGKey(0)
    kp, k1, k2 = jax.random.split(key, 3)

    B, H, L = 2, 4, 16
    params = init_params(kp)
    param_slab = pack_params(params)

    # one-hot DNA input (B, 4, L)
    idx = jax.random.randint(k1, (B, L), 0, H)
    dna_data = jax.nn.one_hot(idx, H, dtype=jnp.float32).transpose(0, 2, 1)

    # Na_data (B, 8); column 7 must be positive (log argument)
    na_data = jax.random.uniform(k2, (B, 8), dtype=jnp.float32,
                                 minval=0.1, maxval=2.0)

    out = forward(param_slab, dna_data, na_data)
    jax.block_until_ready(out)
    assert out.shape == (B, ORIGIN_OUT)

    ref = reference_forward(params, dna_data, na_data)
    assert bool(jnp.all(jnp.isfinite(out)))
    assert bool(jnp.allclose(out, ref, atol=1e-3, rtol=1e-3))
    print("KERNEL_OK")
</pallas_src>

<mosaic_0001>
module attributes {stable_mosaic.version = 11 : i64} {
  func.func @_fused_forward_kernel(%arg0: memref<2x22x4xbf16, #tpu.memory_space<vmem>>, %arg1: memref<2x8xf32, #tpu.memory_space<vmem>>, %arg2: memref<3x32x32xf32, #tpu.memory_space<vmem>>, %arg3: memref<2x3xf32, #tpu.memory_space<vmem>>) attributes {dimension_semantics = [], scalar_prefetch = 0 : i64, scratch_operands = 0 : i64, tpu.core_type = #tpu.core_type<tc>} {
    %c0 = arith.constant 0 : index
    %c0_0 = arith.constant 0 : index
    %c0_1 = arith.constant 0 : index
    %0 = vector.load %arg2[%c0, %c0_0, %c0_1] : memref<3x32x32xf32, #tpu.memory_space<vmem>>, vector<3x32x32xf32>
    %1 = vector.extract_strided_slice %0 {offsets = [0, 0, 0], sizes = [1, 28, 24], strides = [1, 1, 1]} : vector<3x32x32xf32> to vector<1x28x24xf32>
    %2 = vector.shape_cast %1 : vector<1x28x24xf32> to vector<28x24xf32>
    %3 = arith.truncf %2 : vector<28x24xf32> to vector<28x24xbf16>
    %4 = vector.extract_strided_slice %0 {offsets = [1, 0, 0], sizes = [1, 1, 24], strides = [1, 1, 1]} : vector<3x32x32xf32> to vector<1x1x24xf32>
    %5 = vector.shape_cast %4 : vector<1x1x24xf32> to vector<1x24xf32>
    %6 = vector.extract_strided_slice %0 {offsets = [2, 0, 0], sizes = [1, 32, 5], strides = [1, 1, 1]} : vector<3x32x32xf32> to vector<1x32x5xf32>
    %7 = vector.shape_cast %6 : vector<1x32x5xf32> to vector<32x5xf32>
    %8 = vector.extract_strided_slice %0 {offsets = [1, 1, 0], sizes = [1, 1, 5], strides = [1, 1, 1]} : vector<3x32x32xf32> to vector<1x1x5xf32>
    %9 = vector.shape_cast %8 : vector<1x1x5xf32> to vector<1x5xf32>
    %c0_2 = arith.constant 0 : index
    %c0_3 = arith.constant 0 : index
    %c0_4 = arith.constant 0 : index
    %10 = vector.load %arg0[%c0_2, %c0_3, %c0_4] : memref<2x22x4xbf16, #tpu.memory_space<vmem>>, vector<2x22x4xbf16>
    %11 = vector.extract_strided_slice %10 {offsets = [0, 0, 0], sizes = [2, 16, 4], strides = [1, 1, 1]} : vector<2x22x4xbf16> to vector<2x16x4xbf16>
    %12 = vector.extract_strided_slice %10 {offsets = [0, 1, 0], sizes = [2, 16, 4], strides = [1, 1, 1]} : vector<2x22x4xbf16> to vector<2x16x4xbf16>
    %13 = vector.extract_strided_slice %10 {offsets = [0, 2, 0], sizes = [2, 16, 4], strides = [1, 1, 1]} : vector<2x22x4xbf16> to vector<2x16x4xbf16>
    %14 = vector.extract_strided_slice %10 {offsets = [0, 3, 0], sizes = [2, 16, 4], strides = [1, 1, 1]} : vector<2x22x4xbf16> to vector<2x16x4xbf16>
    %15 = vector.extract_strided_slice %10 {offsets = [0, 4, 0], sizes = [2, 16, 4], strides = [1, 1, 1]} : vector<2x22x4xbf16> to vector<2x16x4xbf16>
    %16 = vector.extract_strided_slice %10 {offsets = [0, 5, 0], sizes = [2, 16, 4], strides = [1, 1, 1]} : vector<2x22x4xbf16> to vector<2x16x4xbf16>
    %17 = vector.extract_strided_slice %10 {offsets = [0, 6, 0], sizes = [2, 16, 4], strides = [1, 1, 1]} : vector<2x22x4xbf16> to vector<2x16x4xbf16>
    %18 = tpu.concatenate %11, %12, %13, %14, %15, %16, %17 in 2 : vector<2x16x4xbf16>, vector<2x16x4xbf16>, vector<2x16x4xbf16>, vector<2x16x4xbf16>, vector<2x16x4xbf16>, vector<2x16x4xbf16>, vector<2x16x4xbf16> -> vector<2x16x28xbf16>
    %19 = vector.shape_cast %18 : vector<2x16x28xbf16> to vector<32x28xbf16>
    %cst = arith.constant dense<0.000000e+00> : vector<32x24xf32>
    %20 = tpu.matmul %19, %3, %cst {dimension_numbers = #tpu.dot_dimension_numbers<[1], [0], [0], [1], [0, 0, 1, 1], [], []>} : vector<32x28xbf16>, vector<28x24xbf16>, vector<32x24xf32> -> vector<32x24xf32>
    %21 = vector.broadcast %5 : vector<1x24xf32> to vector<32x24xf32>
    %22 = arith.addf %20, %21 : vector<32x24xf32>
    %cst_5 = arith.constant 0.000000e+00 : f32
    %23 = vector.broadcast %cst_5 : f32 to vector<32x24xf32>
    %24 = arith.maximumf %22, %23 : vector<32x24xf32>
    %25 = vector.shape_cast %24 : vector<32x24xf32> to vector<2x16x24xf32>
    %cst_6 = arith.constant dense<0.000000e+00> : vector<2x24xf32>
    %26 = vector.multi_reduction <add>, %25, %cst_6 [1] : vector<2x16x24xf32> to vector<2x24xf32>
    %cst_7 = arith.constant 6.250000e-02 : f32
    %27 = vector.broadcast %cst_7 : f32 to vector<2x24xf32>
    %28 = arith.mulf %26, %27 : vector<2x24xf32>
    %c0_8 = arith.constant 0 : index
    %c0_9 = arith.constant 0 : index
    %29 = vector.load %arg1[%c0_8, %c0_9] : memref<2x8xf32, #tpu.memory_space<vmem>>, vector<2x8xf32>
    %30 = tpu.concatenate %28, %29 in 1 : vector<2x24xf32>, vector<2x8xf32> -> vector<2x32xf32>
    %cst_10 = arith.constant dense<0.000000e+00> : vector<2x5xf32>
    %31 = tpu.matmul %30, %7, %cst_10 {dimension_numbers = #tpu.dot_dimension_numbers<[1], [0], [0], [1], [0, 0, 1, 1], [], []>} : vector<2x32xf32>, vector<32x5xf32>, vector<2x5xf32> -> vector<2x5xf32>
    %32 = vector.broadcast %9 : vector<1x5xf32> to vector<2x5xf32>
    %33 = arith.addf %31, %32 : vector<2x5xf32>
    %34 = vector.extract_strided_slice %33 {offsets = [0, 0], sizes = [2, 3], strides = [1, 1]} : vector<2x5xf32> to vector<2x3xf32>
    %35 = vector.extract_strided_slice %29 {offsets = [0, 7], sizes = [2, 1], strides = [1, 1]} : vector<2x8xf32> to vector<2x1xf32>
    %36 = math.log %35 : vector<2x1xf32>
    %37 = vector.extract_strided_slice %33 {offsets = [0, 3], sizes = [2, 1], strides = [1, 1]} : vector<2x5xf32> to vector<2x1xf32>
    %38 = arith.mulf %37, %36 : vector<2x1xf32>
    %cst_11 = arith.constant 6.000000e-03 : f32
    %39 = vector.broadcast %cst_11 : f32 to vector<2x1xf32>
    %40 = arith.mulf %38, %39 : vector<2x1xf32>
    %41 = vector.extract_strided_slice %33 {offsets = [0, 4], sizes = [2, 1], strides = [1, 1]} : vector<2x5xf32> to vector<2x1xf32>
    %42 = arith.mulf %41, %36 : vector<2x1xf32>
    %cst_12 = arith.constant 6.000000e-03 : f32
    %43 = vector.broadcast %cst_12 : f32 to vector<2x1xf32>
    %44 = arith.mulf %42, %43 : vector<2x1xf32>
    %45 = tpu.iota {dimensions = array<i32: 1>} : vector<2x3xi32>
    %c2_i32 = arith.constant 2 : i32
    %46 = vector.broadcast %c2_i32 : i32 to vector<2x3xi32>
    %47 = arith.cmpi eq, %45, %46 : vector<2x3xi32>
    %cst_13 = arith.constant 0.000000e+00 : f32
    %48 = vector.shape_cast %40 : vector<2x1xf32> to vector<2x1xf32>
    %49 = vector.broadcast %48 : vector<2x1xf32> to vector<2x3xf32>
    %50 = vector.broadcast %cst_13 : f32 to vector<2x3xf32>
    %51 = arith.select %47, %49, %50 : vector<2x3xi1>, vector<2x3xf32>
    %52 = arith.addf %34, %51 : vector<2x3xf32>
    %c1_i32 = arith.constant 1 : i32
    %53 = vector.broadcast %c1_i32 : i32 to vector<2x3xi32>
    %54 = arith.cmpi eq, %45, %53 : vector<2x3xi32>
    %cst_14 = arith.constant 0.000000e+00 : f32
    %55 = vector.shape_cast %44 : vector<2x1xf32> to vector<2x1xf32>
    %56 = vector.broadcast %55 : vector<2x1xf32> to vector<2x3xf32>
    %57 = vector.broadcast %cst_14 : f32 to vector<2x3xf32>
    %58 = arith.select %54, %56, %57 : vector<2x3xi1>, vector<2x3xf32>
    %59 = arith.addf %52, %58 : vector<2x3xf32>
    %c0_15 = arith.constant 0 : index
    %c0_16 = arith.constant 0 : index
    %60 = vector.load %arg3[%c0_15, %c0_16] : memref<2x3xf32, #tpu.memory_space<vmem>>, vector<2x3xf32>
    tpu.vector_store %arg3[%c0_15, %c0_16], %59 {strides = array<i32>} : memref<2x3xf32, #tpu.memory_space<vmem>>, vector<2x3xf32>,
    return
  }
}

</mosaic_0001>

<bundles_post_ra>
// kernel: forward.1
= control target key start
LH: loop header
LB: loop body
LE: loop exit
PB: predicated region body
PF: predicated region fallthrough
CT: control target
= control target key end

     0   :  { %8 = vsyncpa [#allocation3], 0  ;;  %s532_s0 = inlined_call_operand.vmem [shape: bf16[2,22,4], index: 0, kind: input, shape index: {}]   ;;  %s533_s1 = inlined_call_operand.vmem [shape: f32[2,8], index: 1, kind: input, shape index: {}]   ;;  %s534_s2 = inlined_call_operand.hbm [shape: f32[3,32,32], index: 2, kind: input, shape index: {}]   ;;  %s535_s3 = inlined_call_operand.hbm [shape: f32[2,3], index: 3, kind: output, shape index: {}]  }
   0x1   :  { %9 = vsyncpa [#allocation4], 0  ;;  %s18_s14 = sshll.u32 %s534_s2, 4  ;;  %s423_s15 = smov [#allocation2]   ;;  %s19_s14 = int_to_ptr.hbm [resolvable:$true] %s18_s14 }
   0x2   :  { %s20_s16 = sshll.u32 %s423_s15, 4  ;;  %s424_s17 = smov 128   ;;  %s21_s16 = int_to_ptr.vmem [resolvable:$true] %s20_s16 }
   0x3   :  { %s425_s18 = smov 8  }
   0x4   :  { %26 = dma.hbm_to_vmem [thread:$0]  %s19_s14, 1536, %s21_s16, [#allocation3], %s424_s17, %s424_s17, %s425_s18  }
   0x5   :  { %419 = dma.done.wait [#allocation3], 1536  }
   0x6   :  { %420 = vsyncadd [#allocation3], 4294965760  ;;  %v463_v0 = vld [vmem:[%s532_s0 + $0xc] sm:$0xff]  ;;  %v48_v1 = vld [vmem:[%s532_s0 + $0x14] sm:$0x7]  ;;  %vm128_vm0 = vcmask 1045504  }
   0x7   :  { %v62_v2 = vunpack.c.l.b16 %v48_v1  ;;  %v45_v3 = vld [vmem:[%s532_s0 + $0x8] sm:$0x7]  ;;  %v81_v4 = vshll.u32 %v463_v0, 16  ;;  %v132_v6 = vrot.slane %v463_v0, 2  ;;  %v98_v7 = vrot.slane %v463_v0, 1  ;;  %v478_v14 = vld [vmem:[%s532_s0] sm:$0xff] }
   0x8   :  { %v61_v8 = vunpack.c.l.b16 %v45_v3  ;;  %vm94_vm1 = vcmask 1046528   ;;  %v79_v9 = vshrl.u32 %v463_v0, 16  ;;  %v69_v19 = vshll.u32 %v478_v14, 16  ;;  %s426_s26 = smov 16   ;;  %s427_s0 = smov 24  }
   0x9   :  { %v64_v5 = vpack.c.b16 %v62_v2, %v62_v2  ;;  %v83_v10 = vrot.slane %v81_v4, 1  ;;  %vm65_vm2 = vsmask.f32 7424  ;;  %v95_v22 = vrot.slane %v478_v14, 1  ;;  %s428_s27 = smov 4   ;;  %s429_s28 = smov 20  }
   0xa   :  { %v480_v15 = vpack.c.b16 %v61_v8, %v61_v8  ;;  %v115_v24 = vrot.slane %v79_v9, 1  ;;  %v67_v25 = vshrl.u32 %v478_v14, 16  ;;  %vm158_vm3 = vcmask 1044480   ;;  %s430_s29 = smov 12   ;;  %v35_v8 = vld [vmem:[#allocation2 + $0x18] sm:$0xff]  ;;  %s432_s5 = smov 125  }
   0xb   :  { %v133_v11 = vrot.slane %v64_v5, 2  ;;  %v99_v12 = vrot.slane %v64_v5, 1  ;;  %v86_v13 = vshll.u32 %v64_v5, 16  ;;  %v118_v18 = vshrl.u32 %v64_v5, 16  ;;  %s435_s6 = smov [#allocation5]   ;;  %s328_s10 = sshll.u32 %s535_s3, 4  ;;  %s329_s10 = int_to_ptr.hbm [resolvable:$true] %s328_s10 }
   0xc   :  { %v84_v20 = vor.u32 %v83_v10, %v79_v9  ;;  %v96_v23 = vrot.slane %v480_v15, 1  ;;  %v116_v26 = vrot.slane %v81_v4, 2  ;;  %v71_v28 = vrot.slane %v69_v19, 1  ;;  %s326_s7 = sshll.u32 %s435_s6, 4  ;;  %s327_s7 = int_to_ptr.vmem [resolvable:$true] %s326_s7 }
   0xd   :  { %v134_v16 = vsel %vm128_vm0, %v132_v6, %v133_v11  ;;  %v100_v17 = vsel %vm94_vm1, %v98_v7, %v99_v12  ;;  %v88_v21 = vrot.slane %v86_v13, 1  ;;  %v120_v27 = vrot.slane %v118_v18, 1  ;;  %v34_v7 = vld [vmem:[#allocation2 + $0x10] sm:$0xff]  ;;  %v32_v11 = vld [vmem:[#allocation2] sm:$0xff]  ;;  %v33_v12 = vld [vmem:[#allocation2 + $0x8] sm:$0xff] }
   0xe   :  { %137 = vrot.lane.b32.xlu1 %v134_v16, %s426_s26  ;;  %103 = vrot.lane.b32.xlu0 %v100_v17, %s425_s18  ;;  %v162_v29 = vrot.slane %v463_v0, 3  ;;  %v121_v31 = vrot.slane %v86_v13, 2  ;;  %v74_v32 = vshll.u32 %v480_v15, 16  ;;  %v163_v33 = vrot.slane %v64_v5, 3 }
   0xf   :  { %v89_v30 = vsel %vm65_vm2, %v84_v20, %v88_v21  ;;  %v97_v34 = vsel %vm94_vm1, %v95_v22, %v96_v23  ;;  %v147_v35 = vrot.slane %v79_v9, 2  ;;  %v148_v36 = vrot.slane %v81_v4, 3 }
  0x10   :  { %v150_v37 = vrot.slane %v118_v18, 2  ;;  %v164_v38 = vsel %vm158_vm3, %v162_v29, %v163_v33  ;;  %v151_v39 = vrot.slane %v86_v13, 3  ;;  %v117_v40 = vor.u32 %v116_v26, %v115_v24 }
  0x11   :  { %167 = vrot.lane.b32.xlu2 %v164_v38, %s427_s0  ;;  %v149_v41 = vor.u32 %v148_v36, %v147_v35  ;;  %v122_v43 = vor.u32 %v121_v31, %v120_v27  ;;  %v72_v44 = vor.u32 %v71_v28, %v67_v25  ;;  %v76_v45 = vrot.slane %v74_v32, 1 }
  0x12   :  { %v152_v42 = vor.u32 %v151_v39, %v150_v37  ;;  %v109_v46 = vshrl.u32 %v480_v15, 16  ;;  %vm105_vm4 = vsmask.f32 6400  ;;  %vm139_vm5 = vsmask.f32 5376  ;;  %v40_v39 = vld [vmem:[#allocation2 + $0x58] sm:$0xff] }
  0x13   :  { %v140_v47 = vrot.slane %v67_v25, 2  ;;  %v141_v48 = vrot.slane %v69_v19, 3  ;;  %v106_v49 = vrot.slane %v67_v25, 1  ;;  %v107_v51 = vrot.slane %v69_v19, 2  ;;  %280 = vmatpush.msra.mxu1 %v40_v39 }
  0x14   :  { %v153_v50 = vsel %vm139_vm5, %v149_v41, %v152_v42  ;;  %v111_v52 = vrot.slane %v109_v46, 1  ;;  %v112_v53 = vrot.slane %v74_v32, 2  ;;  %v123_v54 = vsel %vm105_vm4, %v117_v40, %v122_v43  ;;  %v38_v40 = vld [vmem:[#allocation2 + $0x48] sm:$0xff]  ;;  %v37_v41 = vld [vmem:[#allocation2 + $0x40] sm:$0xff] }
  0x15   :  { %v77_v55 = vsel %vm65_vm2, %v72_v44, %v76_v45  ;;  %v143_v56 = vrot.slane %v109_v46, 2  ;;  %v144_v57 = vrot.slane %v74_v32, 3  ;;  %v108_v58 = vor.u32 %v107_v51, %v106_v49  ;;  %v36_v43 = vld [vmem:[#allocation2 + $0x20] sm:$0xff] }
  0x16   :  { %92 = vrot.lane.b32.xlu0 %v89_v30, %s428_s27  ;;  %101 = vrot.lane.b32.xlu1 %v97_v34, %s425_s18  ;;  %v113_v59 = vor.u32 %v112_v53, %v111_v52  ;;  %v129_v60 = vrot.slane %v478_v14, 2  ;;  %v130_v61 = vrot.slane %v480_v15, 2  ;;  %v142_v62 = vor.u32 %v141_v48, %v140_v47 }
  0x17   :  { %v145_v63 = vor.u32 %v144_v57, %v143_v56  ;;  %v159_v4 = vrot.slane %v478_v14, 3  ;;  %v160_v5 = vrot.slane %v480_v15, 3  ;;  %v42_v9 = vpack.c.bf16 %v35_v8, %v34_v7  ;;  %v252_v15 = vld [vmem:[%s533_s1] sm:$0x3]  ;;  %s431_s1 = smov 124  }
  0x18   :  { %v114_v1 = vsel %vm105_vm4, %v108_v58, %v113_v59  ;;  %v131_v2 = vsel %vm128_vm0, %v129_v60, %v130_v61  ;;  %v41_v13 = vpack.c.bf16 %v33_v12, %v32_v11  ;;  %vm169_vm6 = vcmask 31744  }
  0x19   :  { %156 = vrot.lane.b32.xlu2 %v153_v50, %s429_s28  ;;  %v146_v3 = vsel %vm139_vm5, %v142_v62, %v145_v63  ;;  %v161_v6 = vsel %vm158_vm3, %v159_v4, %v160_v5  ;;  %v207_v10 = vsel %vm128_vm0, %v42_v9, 0  ;;  %vm174_vm7 = vcmask 64512  }
  0x1a   :  { %351 = vmatpush.bf16.msra.mxu2 %v207_v10  ;;  %215 = vmatpush.bf16.msra.mxu0 %v207_v10  ;;  %vm179_vm8 = vcmask 97280   ;;  %vm184_vm9 = vcmask 130048   ;;  %vm189_vm10 = vcmask 162816   ;;  %vm194_vm11 = vcmask 195584  }
  0x1b   :  { %vm200_vm12 = vcmask 228352   ;;  %369 = vlog2.f32 %v252_v15  ;;  %v199_v45 = vperm.slane %v36_v43, 0  ;;  %vm255_vm13 = vcmask 1041409  }
  0x1c   :  { %vm264_vm14 = vcmask 261120   ;;  %vm319_vm1 = vcmask 17408  }
  0x1e   :  { %126 = vrot.lane.b32.xlu1 %v123_v54, %s430_s29  ;;  %90 = vrot.lane.b32.xlu0 %v77_v55, %s428_s27 }
  0x1f   :  { %352 = vmatpush.bf16.msra.mxu2 %v41_v13  ;;  %216 = vmatpush.bf16.msra.mxu0 %v41_v13 }
  0x21   :  { %124 = vrot.lane.b32.xlu2 %v114_v1, %s430_s29  ;;  %v370_v42 = vpop.eup %369 }
  0x22   :  { %v289_v47 = vmul.f32 0.6931472, %v370_v42 }
  0x26   :  { %135 = vrot.lane.b32.xlu0 %v131_v2, %s426_s26  ;;  %154 = vrot.lane.b32.xlu1 %v146_v3, %s429_s28 }
  0x29   :  { %165 = vrot.lane.b32.xlu2 %v161_v6, %s427_s0 }
  0x2e   :  { %259 = vrot.lane.b32.xlu0 %v252_v15, %s427_s0  ;;  %291 = vrot.lane.b32.xlu1 %v289_v47, %s431_s1 }
  0x31   :  { %296 = vrot.lane.b32.xlu2 %v289_v47, %s432_s5 }
  0x6b   :  { %v168_v16 = vpop.permute.xlu2 %167 }
  0x73   :  { %v157_v19 = vpop.permute.xlu2 %156 }
  0x7b   :  { %v125_v23 = vpop.permute.xlu2 %124 }
  0x80   :  { %v138_v17 = vpop.permute.xlu1 %137  ;;  %v104_v18 = vpop.permute.xlu0 %103 }
  0x83   :  { %v166_v32 = vpop.permute.xlu2 %165 }
  0x88   :  { %v93_v20 = vpop.permute.xlu0 %92  ;;  %v102_v21 = vpop.permute.xlu1 %101 }
  0x89   :  { %v173_v22 = vsel %vm169_vm6, %v463_v0, %v93_v20  ;;  %v434_v20 = vmov 3  }
  0x8a   :  { %v178_v24 = vsel %vm174_vm7, %v173_v22, %v104_v18  ;;  %366 = vset.pattern.permute.xlu0 %v434_v20 }
  0x90   :  { %v127_v25 = vpop.permute.xlu1 %126  ;;  %v91_v26 = vpop.permute.xlu0 %90 }
  0x91   :  { %v183_v27 = vsel %vm179_vm8, %v178_v24, %v127_v25  ;;  %v171_v29 = vsel %vm169_vm6, %v478_v14, %v91_v26  ;;  %v39_v14 = vld [vmem:[#allocation2 + $0x50] sm:$0xff]  ;;  %v297_v24 = vpop.permute.xlu2 %296 }
  0x92   :  { %v188_v28 = vsel %vm184_vm9, %v183_v27, %v138_v17  ;;  %v176_v0 = vsel %vm174_vm7, %v171_v29, %v102_v21  ;;  %281 = vmatpush.msra.mxu1 %v39_v14  ;;  %v263_v21 = vperm.slane %v36_v43, 1 }
  0x93   :  { %v193_v30 = vsel %vm189_vm10, %v188_v28, %v157_v19  ;;  %v181_v33 = vsel %vm179_vm8, %v176_v0, %v125_v23  ;;  %v433_v19 = vmov 4  }
  0x94   :  { %v198_v31 = vsel %vm194_vm11, %v193_v30, %v168_v16  ;;  %282 = vmatpush.msra.mxu1 %v38_v40  ;;  %367 = vset.pattern.permute.xlu1 %v433_v19  ;;  %v301_v30 = vlaneseq }
  0x95   :  { %347 = vmatmul.msk.bf16.vlgmr.msra.gmra.mxu2 %vm200_vm12, %v198_v31 }
  0x96   :  { %283 = vmatpush.msra.mxu1 %v37_v41  ;;  %v302_v31 = vand.u32 127, %v301_v30 }
  0x98   :  { %v136_v34 = vpop.permute.xlu0 %135  ;;  %v155_v35 = vpop.permute.xlu1 %154  ;;  %vm303_vm15 = vcmp.eq.s32.totalorder %v302_v31, 2  ;;  %vm311_vm0 = vcmp.eq.s32.totalorder %v302_v31, 1 }
  0x99   :  { %v186_v36 = vsel %vm184_vm9, %v181_v33, %v136_v34 }
  0x9a   :  { %v191_v37 = vsel %vm189_vm10, %v186_v36, %v155_v35 }
  0x9b   :  { %v196_v38 = vsel %vm194_vm11, %v191_v37, %v166_v32 }
  0x9c   :  { %346 = vmatmul.msk.bf16.vlgmr.msra.gmra.mxu0 %vm200_vm12, %v196_v38 }
  0xa0   :  { %v260_v16 = vpop.permute.xlu0 %259  ;;  %v292_v22 = vpop.permute.xlu1 %291 }
 0x118   :  { %v223_v44 = vpop.f32.mrf.mxu2 }
 0x119   :  { %v218_v46 = vpop.f32.mrf.mxu0  ;;  %v224_v48 = vadd.f32 %v223_v44, %v199_v45 }
 0x11a   :  { %v219_v49 = vadd.f32 %v218_v46, %v199_v45 }
 0x11b   :  { %v230_v51 = vmax.f32 %v224_v48, 0.0 }
 0x11c   :  { %v228_v54 = vmax.f32 %v219_v49, 0.0 }
 0x11d   :  { %v241_v58 = vsel %vm194_vm11, %v230_v51, 0.0 }
 0x11e   :  { %v232_v60 = vsel %vm194_vm11, %v228_v54, 0.0 }
 0x120   :  { %v225_v50 = vpop.f32.mrf.mxu2 }
 0x121   :  { %v226_v52 = vadd.f32 %v225_v50, %v199_v45  ;;  %v220_v53 = vpop.f32.mrf.mxu0 }
 0x122   :  { %v221_v55 = vadd.f32 %v220_v53, %v199_v45 }
 0x123   :  { %v231_v56 = vmax.f32 %v226_v52, 0.0 }
 0x124   :  { %v229_v57 = vmax.f32 %v221_v55, 0.0 }
 0x125   :  { %v242_v59 = vsel %vm194_vm11, %v231_v56, 0.0 }
 0x126   :  { %v243_v61 = vadd.f32 %v242_v59, %v241_v58  ;;  %v233_v62 = vsel %vm194_vm11, %v229_v57, 0.0 }
 0x127   :  { %v234_v63 = vadd.f32 %v233_v62, %v232_v60 }
 0x128   :  { %v244_v1 = vrot.slane %v243_v61, 4 }
 0x129   :  { %v235_v2 = vrot.slane %v234_v63, 4 }
 0x12a   :  { %v245_v3 = vadd.f32 %v244_v1, %v243_v61 }
 0x12b   :  { %v236_v4 = vadd.f32 %v235_v2, %v234_v63 }
 0x12c   :  { %v246_v5 = vrot.slane %v245_v3, 2 }
 0x12d   :  { %v237_v6 = vrot.slane %v236_v4, 2 }
 0x12e   :  { %v247_v7 = vadd.f32 %v246_v5, %v245_v3 }
 0x12f   :  { %v238_v8 = vadd.f32 %v237_v6, %v236_v4 }
 0x130   :  { %v248_v9 = vrot.slane %v247_v7, 1 }
 0x131   :  { %v239_v10 = vrot.slane %v238_v8, 1 }
 0x132   :  { %v249_v11 = vadd.f32 %v248_v9, %v247_v7 }
 0x133   :  { %v240_v12 = vadd.f32 %v239_v10, %v238_v8 }
 0x134   :  { %v251_v13 = vmul.f32 0.0625, %v249_v11 }
 0x135   :  { %v250_v15 = vmul.f32 0.0625, %v240_v12 }
 0x137   :  { %v256_v17 = vsel %vm255_vm13, %v251_v13, %v250_v15 }
 0x138   :  { %v262_v18 = vsel %vm194_vm11, %v256_v17, %v260_v16 }
 0x139   :  { %348 = vmatmul.msk.f32.vlgmr.msra.gmra.mxu1 %vm264_vm14, %v262_v18 }
 0x1b6   :  { %v285_v23 = vpop.f32.mrf.mxu1 }
 0x1b7   :  { %v286_v25 = vadd.f32 %v285_v23, %v263_v21 }
 0x1b9   :  { %v294_v26 = vmul.f32 %v292_v22, %v286_v25  ;;  %v299_v27 = vmul.f32 %v297_v24, %v286_v25 }
 0x1bb   :  { %v295_v28 = vmul.f32 0.006, %v294_v26  ;;  %v300_v29 = vmul.f32 0.006, %v299_v27 }
 0x1bd   :  { %314 = vperm.xlu1 %367, %v300_v29   ;;  %306 = vperm.xlu0 %366, %v295_v28  }
 0x1c5   :  { %368 = vset.pattern.permute.xlu0 %v433_v19 }
 0x22f   :  { %v315_v0 = vpop.permute.xlu1 %314  ;;  %v307_v32 = vpop.permute.xlu0 %306 }
 0x230   :  { %v309_v33 = vsel %vm303_vm15, %v307_v32, 0.0  ;;  %v317_v35 = vsel %vm311_vm0, %v315_v0, 0.0 }
 0x231   :  { %v310_v34 = vadd.f32 %v309_v33, %v286_v25 }
 0x233   :  { %v318_v36 = vadd.f32 %v317_v35, %v310_v34 }
 0x235   :  { %320 = vst.msk [vmem:[#allocation5] sm:$0x3] %vm319_vm1, %v318_v36 }
 0x236   :  { %331 = dma.vmem_to_hbm [thread:$0]  %s327_s7, 32, %s329_s10, [#allocation4]  }
 0x237   :  { %421 = dma.done.wait [#allocation4], 32  }
 0x238   :  { %422 = vsyncadd [#allocation4], 4294967264 }
 0x239   :  { %336 = vsyncpa [#allocation3], 1 }
 0x23a   :  { %337 = vsyncpa [#allocation4], 1 }

</bundles_post_ra>
